<compile_context>
chip_gen: v7x
topology: tpu7x:2x2x1
jax: 0.10.0
libtpu: 0.0.40
codegen_flags: <defaults>
</compile_context>

<pallas_src>
import jax
import jax.numpy as jnp
from jax.experimental import pallas as pl
from jax.experimental.pallas import tpu as pltpu

_LANE = 128
_SUB = 8


def _vmem_capacity_bytes():
    """Best-effort VMEM capacity query; 0 => unknown (be conservative)."""
    try:
        return int(pltpu.get_tpu_info().vmem_capacity_bytes)
    except Exception:
        return 0


def _make_sum_kernel(loss_type, block_rows, t_inner, valid_rows, needs_mask):
    """Builds a kernel that accumulates the per-element loss terms of one
    (block_rows, 128) tile into a resident (1, 8, 128) f32 output block."""

    def kernel(x_ref, g_ref, out_ref):
        j = pl.program_id(1)

        @pl.when(j == 0)
        def _():
            out_ref[...] = jnp.zeros_like(out_ref)

        x = x_ref[...].astype(jnp.float32)
        g = g_ref[...].astype(jnp.float32)

        if loss_type == "bce":
            # torch.nn.BCELoss: -(g*log(x) + (1-g)*log(1-x)), logs clamped at -100.
            log_x = jnp.maximum(jnp.log(x), -100.0)
            log_1mx = jnp.maximum(jnp.log(1.0 - x), -100.0)
            term = -(g * log_x + (1.0 - g) * log_1mx)
        else:  # mse
            d = x - g
            term = d * d

        if needs_mask:
            # Mask rows past the end of the real array (partial / dummy blocks).
            s = pl.program_id(0)
            blk = s * t_inner + j
            row0 = blk * block_rows
            rows = row0 + jax.lax.broadcasted_iota(jnp.int32, term.shape, 0)
            term = jnp.where(rows < valid_rows, term, 0.0)

        # Pure VPU reduction: collapse block_rows -> 8 sublanes (one vreg add
        # per (8,128) tile of the block), keep lanes; accumulate into the
        # resident output block.
        psum = jnp.sum(term.reshape(block_rows // _SUB, _SUB, _LANE), axis=0)
        out_ref[...] += psum[None]

    return kernel


def _pallas_sum(x2d, g2d, loss_type):
    """Sum of per-element loss terms over an (R, 128) array pair."""
    R, lanes = x2d.shape
    assert lanes == _LANE and R >= _SUB

    # Generation-aware block sizing: keep 2 inputs x 2 pipeline buffers well
    # inside VMEM.  >=96 MiB VMEM (v5e/v6e): 8192-row f32 blocks (16 MiB of
    # double-buffered inputs).  Otherwise (v7x 64 MiB, or unknown): 4096 rows.
    vmem = _vmem_capacity_bytes()
    if vmem >= 96 * 1024 * 1024:
        br_max, vmem_limit = 8192, 64 * 1024 * 1024
    else:
        br_max, vmem_limit = 4096, 32 * 1024 * 1024

    block_rows = min(br_max, (R // _SUB) * _SUB)        # multiple of 8, <= R
    t_blocks = -(-R // block_rows)                      # ceil
    n_split = 2 if t_blocks >= 2 else 1                 # 2 TCs on v7x; harmless elsewhere
    t_inner = -(-t_blocks // n_split)
    needs_mask = (n_split * t_inner * block_rows != R)

    kernel = _make_sum_kernel(loss_type, block_rows, t_inner, R, needs_mask)

    def in_map(s, j):
        # Clamp dummy trailing blocks of the split axis; they are fully masked.
        return (jnp.minimum(s * t_inner + j, t_blocks - 1), 0)

    out = pl.pallas_call(
        kernel,
        out_shape=jax.ShapeDtypeStruct((n_split, _SUB, _LANE), jnp.float32),
        grid_spec=pltpu.PrefetchScalarGridSpec(
            num_scalar_prefetch=0,
            grid=(n_split, t_inner),
            in_specs=[
                pl.BlockSpec((block_rows, _LANE), in_map),
                pl.BlockSpec((block_rows, _LANE), in_map),
            ],
            out_specs=pl.BlockSpec((1, _SUB, _LANE), lambda s, j: (s, 0, 0)),
        ),
        compiler_params=pltpu.CompilerParams(
            dimension_semantics=("parallel", "arbitrary"),
            vmem_limit_bytes=vmem_limit,
        ),
    )(x2d, g2d)
    return jnp.sum(out)


def _to_rows128(x):
    """Flatten to (rows, 128).  Free (no copy) when x.size % 128 == 0; only
    pads (copies) for ragged sizes or tiny (<1024-element) inputs.  Zero
    padding contributes exactly 0 to both BCE (x=0, g=0) and MSE sums."""
    xf = x.reshape(-1)
    n = xf.shape[0]
    target = max(_SUB * _LANE, ((n + _LANE - 1) // _LANE) * _LANE)
    pad = target - n
    if pad:
        xf = jnp.pad(xf, (0, pad))
    return xf.reshape(-1, _LANE)


def multi_scale_silhouette_loss(inputs, targets, num_scales=1, loss_type="bce"):
    """JAX/Pallas equivalent of MultiScaleSilhouetteLoss.forward.

    inputs: NCHW float array with values in (0, 1) for BCE.
    targets: NCHW array (any real dtype, incl. bool/int8); widened in-kernel.
    """
    # TODO(synk): 'iou' loss_type (per-batch-row mean reduction) not implemented.
    # TODO(synk): for num_scales > 1 the per-scale strided slices still make
    #   XLA-side copies; a fully-fused single-pass weighted kernel would read
    #   the input once for all scales.
    assert loss_type in ("bce", "mse")

    original_size = targets.shape[-1]
    total = jnp.float32(0.0)
    for i in range(num_scales):
        if i > 0:
            # F.interpolate(..., size=original_size // 2**i) default mode is
            # 'nearest'; for exact integer factors this equals strided slicing.
            out_size = original_size // (2 ** i)
            stride = original_size // out_size
            x = inputs[..., ::stride, ::stride]
            gt = targets[..., ::stride, ::stride]
        else:
            x, gt = inputs, targets

        n = int(x.size)
        x2 = _to_rows128(x)
        g2 = _to_rows128(gt)                    # native dtype; no f32 upcast here
        s = _pallas_sum(x2, g2, loss_type)
        mean = s / jnp.float32(n)
        if loss_type == "bce":
            total = total + mean
        else:  # mse branch in the reference: ((x-gt)**2).mean() * 0.5
            total = total + mean * 0.5
    return total / num_scales


def _reference_loss(inputs, targets, num_scales=1, loss_type="bce"):
    original_size = targets.shape[-1]
    total = 0.0
    for i in range(num_scales):
        if i > 0:
            stride = 2 ** i
            x = inputs[..., ::stride, ::stride]
            gt = targets[..., ::stride, ::stride].astype(jnp.float32)
        else:
            x, gt = inputs, targets.astype(jnp.float32)
        if loss_type == "bce":
            t = -(gt * jnp.maximum(jnp.log(x), -100.0)
                  + (1.0 - gt) * jnp.maximum(jnp.log(1.0 - x), -100.0))
            total = total + jnp.mean(t)
        else:
            total = total + jnp.mean((x - gt) ** 2) * 0.5
    return total / num_scales


if __name__ == "__main__":
    key = jax.random.PRNGKey(0)
    k1, k2 = jax.random.split(key)
    B, C, H, W = 2, 4, 16, 16
    # Predictions in (0,1) as BCELoss requires; binary silhouette targets.
    inputs = jax.nn.sigmoid(jax.random.normal(k1, (B, C, H, W), jnp.float32))
    targets = (jax.random.uniform(k2, (B, C, H, W)) > 0.5).astype(jnp.float32)

    # Default config: num_scales=1, loss_type='bce'
    loss_bce = jax.block_until_ready(
        multi_scale_silhouette_loss(inputs, targets, num_scales=1, loss_type="bce"))
    ref_bce = _reference_loss(inputs, targets, num_scales=1, loss_type="bce")
    assert jnp.allclose(loss_bce, ref_bce, rtol=1e-5, atol=1e-5), (loss_bce, ref_bce)

    # Exercise multi-scale path + mse branch as well.
    loss_mse = jax.block_until_ready(
        multi_scale_silhouette_loss(inputs, targets, num_scales=2, loss_type="mse"))
    ref_mse = _reference_loss(inputs, targets, num_scales=2, loss_type="mse")
    assert jnp.allclose(loss_mse, ref_mse, rtol=1e-5, atol=1e-5), (loss_mse, ref_mse)

    print("KERNEL_OK")
</pallas_src>

<mosaic_0001>
module attributes {stable_mosaic.version = 11 : i64} {
  func.func @kernel(%arg0: i32, %arg1: i32, %arg2: memref<16x128xf32, #tpu.memory_space<vmem>>, %arg3: memref<16x128xf32, #tpu.memory_space<vmem>>, %arg4: memref<1x8x128xf32, #tpu.memory_space<vmem>>) attributes {dimension_semantics = [#tpu.dimension_semantics<parallel>, #tpu.dimension_semantics<arbitrary>], iteration_bounds = array<i64: 1, 1>, scalar_prefetch = 0 : i64, scratch_operands = 0 : i64, tpu.core_type = #tpu.core_type<tc>, window_params = [{transform_indices = @transform_0, window_bounds = array<i64: 16, 128>}, {transform_indices = @transform_1, window_bounds = array<i64: 16, 128>}, {transform_indices = @transform_2, window_bounds = array<i64: 1, 8, 128>}]} {
    %c0_i32 = arith.constant 0 : i32
    %0 = arith.cmpi eq, %arg1, %c0_i32 : i32
    %1 = arith.extui %0 : i1 to i32
    %c0_i32_0 = arith.constant 0 : i32
    %2 = arith.cmpi ne, %1, %c0_i32_0 : i32
    scf.if %2 {
      %cst_15 = arith.constant 0.000000e+00 : f32
      %26 = vector.broadcast %cst_15 : f32 to vector<1x8x128xf32>
      %c0_16 = arith.constant 0 : index
      %c0_17 = arith.constant 0 : index
      %c0_18 = arith.constant 0 : index
      %27 = vector.load %arg4[%c0_16, %c0_17, %c0_18] : memref<1x8x128xf32, #tpu.memory_space<vmem>>, vector<1x8x128xf32>
      tpu.vector_store %arg4[%c0_16, %c0_17, %c0_18], %26 {strides = array<i32>} : memref<1x8x128xf32, #tpu.memory_space<vmem>>, vector<1x8x128xf32>,
    } else {
    }
    %c0 = arith.constant 0 : index
    %c0_1 = arith.constant 0 : index
    %3 = vector.load %arg2[%c0, %c0_1] : memref<16x128xf32, #tpu.memory_space<vmem>>, vector<16x128xf32>
    %c0_2 = arith.constant 0 : index
    %c0_3 = arith.constant 0 : index
    %4 = vector.load %arg3[%c0_2, %c0_3] : memref<16x128xf32, #tpu.memory_space<vmem>>, vector<16x128xf32>
    %5 = math.log %3 : vector<16x128xf32>
    %cst = arith.constant -1.000000e+02 : f32
    %6 = vector.broadcast %cst : f32 to vector<16x128xf32>
    %7 = arith.maximumf %5, %6 : vector<16x128xf32>
    %cst_4 = arith.constant 1.000000e+00 : f32
    %8 = vector.broadcast %cst_4 : f32 to vector<16x128xf32>
    %9 = arith.subf %8, %3 : vector<16x128xf32>
    %10 = math.log %9 : vector<16x128xf32>
    %cst_5 = arith.constant -1.000000e+02 : f32
    %11 = vector.broadcast %cst_5 : f32 to vector<16x128xf32>
    %12 = arith.maximumf %10, %11 : vector<16x128xf32>
    %13 = arith.mulf %4, %7 : vector<16x128xf32>
    %cst_6 = arith.constant 1.000000e+00 : f32
    %14 = vector.broadcast %cst_6 : f32 to vector<16x128xf32>
    %15 = arith.subf %14, %4 : vector<16x128xf32>
    %16 = arith.mulf %15, %12 : vector<16x128xf32>
    %17 = arith.addf %13, %16 : vector<16x128xf32>
    %cst_7 = arith.constant 0.000000e+00 : f32
    %18 = vector.broadcast %cst_7 : f32 to vector<16x128xf32>
    %19 = arith.subf %18, %17 : vector<16x128xf32>
    %20 = vector.shape_cast %19 : vector<16x128xf32> to vector<2x8x128xf32>
    %cst_8 = arith.constant dense<0.000000e+00> : vector<8x128xf32>
    %21 = vector.multi_reduction <add>, %20, %cst_8 [0] : vector<2x8x128xf32> to vector<8x128xf32>
    %c0_9 = arith.constant 0 : index
    %c0_10 = arith.constant 0 : index
    %c0_11 = arith.constant 0 : index
    %22 = vector.load %arg4[%c0_9, %c0_10, %c0_11] : memref<1x8x128xf32, #tpu.memory_space<vmem>>, vector<1x8x128xf32>
    %23 = vector.shape_cast %21 : vector<8x128xf32> to vector<1x8x128xf32>
    %24 = arith.addf %22, %23 : vector<1x8x128xf32>
    %c0_12 = arith.constant 0 : index
    %c0_13 = arith.constant 0 : index
    %c0_14 = arith.constant 0 : index
    %25 = vector.load %arg4[%c0_12, %c0_13, %c0_14] : memref<1x8x128xf32, #tpu.memory_space<vmem>>, vector<1x8x128xf32>
    tpu.vector_store %arg4[%c0_12, %c0_13, %c0_14], %24 {strides = array<i32>} : memref<1x8x128xf32, #tpu.memory_space<vmem>>, vector<1x8x128xf32>,
    return
  }
  func.func @transform_0(%arg0: i32, %arg1: i32) -> (i32, i32) {
    %c1_i32 = arith.constant 1 : i32
    %0 = arith.muli %arg0, %c1_i32 : i32
    %1 = arith.addi %0, %arg1 : i32
    %c0_i32 = arith.constant 0 : i32
    %2 = arith.minsi %1, %c0_i32 : i32
    %c0_i32_0 = arith.constant 0 : i32
    %c0_i32_1 = arith.constant 0 : i32
    return %2, %c0_i32_0 : i32, i32
  }
  func.func @transform_1(%arg0: i32, %arg1: i32) -> (i32, i32) {
    %c1_i32 = arith.constant 1 : i32
    %0 = arith.muli %arg0, %c1_i32 : i32
    %1 = arith.addi %0, %arg1 : i32
    %c0_i32 = arith.constant 0 : i32
    %2 = arith.minsi %1, %c0_i32 : i32
    %c0_i32_0 = arith.constant 0 : i32
    %c0_i32_1 = arith.constant 0 : i32
    return %2, %c0_i32_0 : i32, i32
  }
  func.func @transform_2(%arg0: i32, %arg1: i32) -> (i32, i32, i32) {
    %c0_i32 = arith.constant 0 : i32
    %c0_i32_0 = arith.constant 0 : i32
    %c0_i32_1 = arith.constant 0 : i32
    return %arg0, %c0_i32, %c0_i32_0 : i32, i32, i32
  }
}

</mosaic_0001>

<bundles_post_ra>
// kernel: tpu_custom_call.1
= control target key start
LH: loop header
LB: loop body
LE: loop exit
PB: predicated region body
PF: predicated region fallthrough
CT: control target
= control target key end

     0   :  { %7 = vsyncpa [#allocation3], 0  ;;  %s259_s0 = inlined_call_operand.hbm [shape: f32[16,128], index: 0, kind: input, shape index: {}]   ;;  %s260_s1 = inlined_call_operand.hbm [shape: f32[16,128], index: 1, kind: input, shape index: {}]   ;;  %s261_s2 = inlined_call_operand.hbm [shape: f32[1,8,128], index: 2, kind: output, shape index: {}]  }
   0x1   :  { %8 = vsyncpa [#allocation6], 0 }
   0x2   :  { %9 = vsyncpa [#allocation4], 0  ;;  %s203_s9 = smov [#allocation2]   ;;  %s131_s13 = scalar_lea.hbm %s259_s0, 256 }
   0x3   :  { %s21_s10 = sshll.u32 %s203_s9, 4  ;;  %p132_p0 = scmp.ne.s32.totalorder %s259_s0, %s131_s13  ;;  %s22_s10 = int_to_ptr.vmem [resolvable:$true] %s21_s10 }
   0x4   :  { %p135_p1 = scmp.lt.u32.totalorder %s131_s13, %s259_s0 }
   0x6   :  { %p137_p2 = pnand %p135_p1, %p132_p0 }
   0x8   :  { %140 = shalt.err (!%p137_p2)
}
   0x9   :  { %s141_s18 = scalar_lea.vmem %s22_s10, 256  ;;  %p146_p4 = scmp.lt.s32.totalorder %s22_s10, %s22_s10 }
   0xa   :  { %p142_p3 = scmp.ne.s32.totalorder %s22_s10, %s141_s18  ;;  %p147_p5 = scmp.lt.s32.totalorder %s141_s18, %s141_s18 }
   0xc   :  { %p148_p6 = por %p147_p5, %p146_p4 }
   0xe   :  { %p149_p7 = pnand %p148_p6, %p142_p3 }
  0x10   :  { %152 = shalt.err (!%p149_p7)
}
  0x11   :  { %s204_s19 = smov 128   ;;  %s205_s20 = smov 8  }
  0x12   :  { %27 = dma.hbm_to_vmem [thread:$0]  %s259_s0, 256, %s22_s10, [#allocation3], %s204_s19, %s204_s19, %s205_s20  }
  0x13   :  { %s206_s23 = smov [#allocation5]   ;;  %s153_s27 = scalar_lea.hbm %s260_s1, 256 }
  0x14   :  { %s39_s24 = sshll.u32 %s206_s23, 4  ;;  %p154_p8 = scmp.ne.s32.totalorder %s260_s1, %s153_s27  ;;  %s40_s24 = int_to_ptr.vmem [resolvable:$true] %s39_s24 }
  0x15   :  { %p157_p9 = scmp.lt.u32.totalorder %s153_s27, %s260_s1 }
  0x17   :  { %p159_p10 = pnand %p157_p9, %p154_p8 }
  0x19   :  { %162 = shalt.err (!%p159_p10)
}
  0x1a   :  { %s163_s4 = scalar_lea.vmem %s40_s24, 256  ;;  %p168_p12 = scmp.lt.s32.totalorder %s40_s24, %s40_s24 }
  0x1b   :  { %p164_p11 = scmp.ne.s32.totalorder %s40_s24, %s163_s4  ;;  %p169_p13 = scmp.lt.s32.totalorder %s163_s4, %s163_s4 }
  0x1d   :  { %p170_p0 = por %p169_p13, %p168_p12 }
  0x1f   :  { %p171_p1 = pnand %p170_p0, %p164_p11 }
  0x21   :  { %174 = shalt.err (!%p171_p1)
}
  0x22   :  { %45 = dma.hbm_to_vmem [thread:$0]  %s260_s1, 256, %s40_s24, [#allocation6], %s204_s19, %s204_s19, %s205_s20  }
  0x23   :  { %197 = dma.done.wait [#allocation3], 256  }
  0x24   :  { %198 = vsyncadd [#allocation3], 4294967040 }
  0x25   :  { %199 = dma.done.wait [#allocation6], 256  }
  0x26   :  { %200 = vsyncadd [#allocation6], 4294967040  ;;  %v65_v0 = vld [vmem:[#allocation2] sm:$0xff]  ;;  %v66_v1 = vld [vmem:[#allocation2 + $0x8] sm:$0xff]  ;;  %s207_s1 = smov [#allocation7]  }
  0x27   :  { %123 = vlog2.f32 %v65_v0  ;;  %v75_v2 = vsub.f32 1.0, %v65_v0  ;;  %v76_v3 = vsub.f32 1.0, %v66_v1  ;;  %v67_v5 = vld [vmem:[#allocation5] sm:$0xff]  ;;  %v68_v7 = vld [vmem:[#allocation5 + $0x8] sm:$0xff]  ;;  %s103_s6 = sshll.u32 %s207_s1, 4  ;;  %s104_s6 = int_to_ptr.vmem [resolvable:$true] %s103_s6 }
  0x28   :  { %125 = vlog2.f32 %v66_v1  ;;  %v85_v14 = vsub.f32 1.0, %v67_v5  ;;  %v86_v17 = vsub.f32 1.0, %v68_v7  ;;  %s175_s7 = scalar_lea.vmem %s104_s6, 128  ;;  %p180_p3 = scmp.lt.s32.totalorder %s104_s6, %s104_s6 }
  0x29   :  { %127 = vlog2.f32 %v75_v2  ;;  %p176_p2 = scmp.ne.s32.totalorder %s104_s6, %s175_s7  ;;  %p181_p4 = scmp.lt.s32.totalorder %s175_s7, %s175_s7 }
  0x2a   :  { %129 = vlog2.f32 %v76_v3 }
  0x2b   :  { %p182_p5 = por %p181_p4, %p180_p3 }
  0x2d   :  { %p183_p6 = pnand %p182_p5, %p176_p2 }
  0x31   :  { %v124_v4 = vpop.eup %123 }
  0x32   :  { %v126_v6 = vpop.eup %125  ;;  %v70_v8 = vmul.f32 0.6931472, %v124_v4 }
  0x33   :  { %v128_v9 = vpop.eup %127  ;;  %v72_v10 = vmul.f32 0.6931472, %v126_v6 }
  0x34   :  { %v130_v11 = vpop.eup %129  ;;  %v73_v12 = vmax.f32 %v70_v8, -100.0  ;;  %v78_v13 = vmul.f32 0.6931472, %v128_v9 }
  0x35   :  { %v74_v15 = vmax.f32 %v72_v10, -100.0  ;;  %v80_v16 = vmul.f32 0.6931472, %v130_v11 }
  0x36   :  { %v81_v18 = vmax.f32 %v78_v13, -100.0  ;;  %v83_v19 = vmul.f32 %v73_v12, %v67_v5 }
  0x37   :  { %v82_v20 = vmax.f32 %v80_v16, -100.0  ;;  %v84_v21 = vmul.f32 %v74_v15, %v68_v7 }
  0x38   :  { %v87_v22 = vmul.f32 %v85_v14, %v81_v18 }
  0x39   :  { %v88_v23 = vmul.f32 %v86_v17, %v82_v20 }
  0x3a   :  { %v89_v24 = vadd.f32 %v87_v22, %v83_v19 }
  0x3b   :  { %v90_v25 = vadd.f32 %v88_v23, %v84_v21 }
  0x3c   :  { %v91_v26 = vsub.f32 0.0, %v89_v24 }
  0x3d   :  { %v92_v27 = vsub.f32 0.0, %v90_v25 }
  0x3f   :  { %v93_v28 = vadd.f32 %v92_v27, %v91_v26 }
  0x41   :  { %96 = vst [vmem:[#allocation7] sm:$0xff] %v93_v28 }
  0x42   :  { %186 = shalt.err (!%p183_p6)
}
  0x43   :  { %s187_s10 = scalar_lea.hbm %s261_s2, 128 }
  0x44   :  { %p188_p7 = scmp.ne.s32.totalorder %s261_s2, %s187_s10  ;;  %p191_p8 = scmp.lt.u32.totalorder %s187_s10, %s261_s2 }
  0x46   :  { %p193_p9 = pnand %p191_p8, %p188_p7 }
  0x48   :  { %196 = shalt.err (!%p193_p9)
}
  0x49   :  { %106 = dma.vmem_to_hbm [thread:$0]  %s104_s6, 128, %s261_s2, [#allocation4]  }
  0x4a   :  { %201 = dma.done.wait [#allocation4], 128  }
  0x4b   :  { %202 = vsyncadd [#allocation4], 4294967168 }
  0x4c   :  { %110 = vsyncpa [#allocation3], 1 }
  0x4d   :  { %111 = vsyncpa [#allocation6], 1 }
  0x4e   :  { %112 = vsyncpa [#allocation4], 1 }

</bundles_post_ra>
